<compile_context>
chip_gen: v7x
topology: tpu7x:2x2x1
jax: 0.10.0
libtpu: 0.0.40
codegen_flags: <defaults>
</compile_context>

<pallas_src>
import functools

import jax
import jax.numpy as jnp
import numpy as np
from jax.experimental import pallas as pl
from jax.experimental.pallas import tpu as pltpu

CARDINALITY_ITEM = 16


# --------------------------------------------------------------------------- #
# Pallas kernel
# --------------------------------------------------------------------------- #
def _residual_unit_kernel(x_ref, w_ref, ss_ref, out_ref, *, l, T, w, ar, pad, bb):
    """bb batch elements: out = x + lrelu(bn2(conv2(lrelu(bn1(conv1(x))))))."""
    col = jax.lax.broadcasted_iota(jnp.int32, (l, T), 1)   # lane (time) index

    w1 = w_ref[0]                       # (l, w*l) bf16, tap-fused dense conv1
    w2 = w_ref[1]                       # (l, w*l) bf16, tap-fused dense conv2
    ss = ss_ref[...]                    # (l, 4) f32 packed scale/shift
    s1, t1 = ss[:, 0:1], ss[:, 1:2]
    s2, t2 = ss[:, 2:3], ss[:, 3:4]

    def tap_stack(v):
        """(l, T) f32 -> (w*l, T) bf16: w tap-shifted copies stacked on sublanes.

        Tap k needs v[:, t + k*ar - pad] with zeros outside [0, T): implemented
        as an XLU lane roll plus an iota edge mask (no padded scratch, no
        misaligned loads). Wrapped columns are exactly the masked ones.
        """
        parts = []
        for k in range(w):              # w is small & static
            d = k * ar - pad
            if d == 0:
                tap = v
            else:
                rolled = pltpu.roll(v, (-d) % T, axis=1)    # rolled[:, t] = v[:, (t+d) % T]
                valid = jnp.logical_and(col + d >= 0, col + d < T)
                tap = jnp.where(valid, rolled, 0.0)
            parts.append(tap.astype(jnp.bfloat16))
        return jnp.concatenate(parts, axis=0)

    def lrelu(z):
        return jnp.where(z > 0, z, 0.1 * z)

    for b in range(bb):                 # bb is small & static
        x_b = x_ref[b]                  # (l, T) f32

        # conv1 (one MXU matmul) + folded bias/BN + LeakyReLU(0.1)
        z1 = jnp.dot(w1, tap_stack(x_b), preferred_element_type=jnp.float32)
        x1 = lrelu(z1 * s1 + t1)

        # conv2 (one MXU matmul) + folded bias/BN + LeakyReLU(0.1)
        z2 = jnp.dot(w2, tap_stack(x1), preferred_element_type=jnp.float32)
        x2 = lrelu(z2 * s2 + t2)

        out_ref[b] = x_b + x2           # residual add (f32)


# --------------------------------------------------------------------------- #
# Wrapper (no padding, no transposes — x goes straight into the kernel)
# --------------------------------------------------------------------------- #
def residual_unit_forward(x, y, params, *, w, ar):
    """x, y: (N, l, T) float32. Returns (x + x2, y) exactly like the torch module."""
    N, l, T = x.shape
    assert ((w - 1) * ar) % 2 == 0, (
        "asymmetric 'same' padding: PyTorch pad=(w-1)*ar//2 assumes (w-1)*ar even")
    pad = (w - 1) * ar // 2
    assert (w - 1) * ar < T, "tap offsets must stay within one time tile"

    w_big, ss = params                  # (2, l, w*l) bf16, (l, 4) f32

    # Batch blocking: keep (up to) 2 parallel grid steps so both v7x TensorCores
    # get work; remaining batch elements are fused into each step to amortize
    # the ~0.35us/step pipeline overhead on v5e/v6e.
    bb = N // 2 if (N >= 2 and N % 2 == 0) else 1
    grid_n = N // bb

    kernel = functools.partial(_residual_unit_kernel,
                               l=l, T=T, w=w, ar=ar, pad=pad, bb=bb)
    out = pl.pallas_call(
        kernel,
        out_shape=jax.ShapeDtypeStruct((N, l, T), jnp.float32),
        grid_spec=pltpu.PrefetchScalarGridSpec(
            num_scalar_prefetch=0,
            grid=(grid_n,),
            in_specs=[
                pl.BlockSpec((bb, l, T), lambda n: (n, 0, 0)),      # x, unpadded
                pl.BlockSpec((2, l, w * l), lambda n: (0, 0, 0)),   # fused conv weights (bf16)
                pl.BlockSpec((l, 4), lambda n: (0, 0)),             # packed scale/shift (f32)
            ],
            out_specs=pl.BlockSpec((bb, l, T), lambda n: (n, 0, 0)),
        ),
        compiler_params=pltpu.CompilerParams(dimension_semantics=("parallel",)),
    )(x, w_big, ss)
    return out, y


# --------------------------------------------------------------------------- #
# Deterministic parameter construction + host-side folding/packing
# --------------------------------------------------------------------------- #
def init_params(key, l, w_size, groups):
    cin_g = l // groups
    keys = jax.random.split(key, 12)

    def conv_p(kw, kb):
        W = 0.1 * jax.random.normal(kw, (l, cin_g, w_size), jnp.float32)
        b = 0.1 * jax.random.normal(kb, (l,), jnp.float32)
        return W, b

    def bn_p(kg, kb, km, kv):
        gamma = 1.0 + 0.1 * jax.random.normal(kg, (l,), jnp.float32)
        beta = 0.1 * jax.random.normal(kb, (l,), jnp.float32)
        mean = 0.1 * jax.random.normal(km, (l,), jnp.float32)
        var = jax.random.uniform(kv, (l,), jnp.float32, minval=0.5, maxval=1.5)
        return gamma, beta, mean, var

    W1, b1 = conv_p(keys[0], keys[1])
    g1, be1, m1, v1 = bn_p(keys[2], keys[3], keys[4], keys[5])
    W2, b2 = conv_p(keys[6], keys[7])
    g2, be2, m2, v2 = bn_p(keys[8], keys[9], keys[10], keys[11])
    return (W1, b1, g1, be1, m1, v1), (W2, b2, g2, be2, m2, v2)


def densify_grouped_weight_im2col(W, l, groups):
    """(l, l//groups, w) grouped Conv1d weight -> tap-fused dense (l, w*l) matrix.

    Column k*l + i is the weight from input channel i at tap k to each output
    channel (zero outside that output's group), so conv == W_big @ tap_stack(x).
    """
    cin_g = l // groups
    out_g = l // groups
    Wnp = np.asarray(W)                                   # (l, cin_g, w)
    wk = Wnp.shape[2]
    big = np.zeros((l, wk * l), dtype=np.float32)
    for o in range(l):
        g = o // out_g
        for k in range(wk):
            big[o, k * l + g * cin_g:k * l + (g + 1) * cin_g] = Wnp[o, :, k]
    return big


def fold_bn(bias, gamma, beta, mean, var, eps=1e-5):
    """Fold conv bias + eval-mode BatchNorm into per-channel scale/shift (l,)."""
    scale = np.asarray(gamma) / np.sqrt(np.asarray(var) + eps)
    shift = (np.asarray(bias) - np.asarray(mean)) * scale + np.asarray(beta)
    return scale.astype(np.float32), shift.astype(np.float32)


def pack_params(raw, l, groups):
    (W1, b1, g1, be1, m1, v1), (W2, b2, g2, be2, m2, v2) = raw
    big1 = densify_grouped_weight_im2col(W1, l, groups)
    big2 = densify_grouped_weight_im2col(W2, l, groups)
    w_big = jnp.asarray(np.stack([big1, big2], axis=0), jnp.bfloat16)   # (2, l, w*l)
    s1, t1 = fold_bn(b1, g1, be1, m1, v1)
    s2, t2 = fold_bn(b2, g2, be2, m2, v2)
    ss = jnp.asarray(np.stack([s1, t1, s2, t2], axis=1), jnp.float32)   # (l, 4)
    return w_big, ss


# --------------------------------------------------------------------------- #
# Pure-JAX reference (grouped dilated conv via lax) for validation
# --------------------------------------------------------------------------- #
def reference_forward(x, y, raw_params, *, w_size, ar, groups, eps=1e-5):
    (W1, b1, g1, be1, m1, v1), (W2, b2, g2, be2, m2, v2) = raw_params
    pad = (w_size - 1) * ar // 2

    def conv(inp, W, b):
        out = jax.lax.conv_general_dilated(
            inp, W, window_strides=(1,), padding=[(pad, pad)],
            rhs_dilation=(ar,), dimension_numbers=('NCH', 'OIH', 'NCH'),
            feature_group_count=groups)
        return out + b[None, :, None]

    def bn(z, gamma, beta, mean, var):
        return ((z - mean[None, :, None]) / jnp.sqrt(var[None, :, None] + eps)
                * gamma[None, :, None] + beta[None, :, None])

    def lrelu(z):
        return jnp.where(z > 0, z, 0.1 * z)

    x1 = lrelu(bn(conv(x, W1, b1), g1, be1, m1, v1))
    x2 = lrelu(bn(conv(x1, W2, b2), g2, be2, m2, v2))
    return x + x2, y


# --------------------------------------------------------------------------- #
if __name__ == "__main__":
    # ResidualUnit(l=32, w=3, ar=2) -> groups C = 32 // CARDINALITY_ITEM = 2
    L, W_SIZE, AR = 32, 3, 2
    GROUPS = L // CARDINALITY_ITEM
    N, T = 2, 128

    key = jax.random.PRNGKey(0)
    kx, ky, kp = jax.random.split(key, 3)
    x = jax.random.normal(kx, (N, L, T), jnp.float32)
    y = jax.random.normal(ky, (N, L, T), jnp.float32)

    raw = init_params(kp, L, W_SIZE, GROUPS)
    params = pack_params(raw, L, GROUPS)

    out, y_out = residual_unit_forward(x, y, params, w=W_SIZE, ar=AR)
    out = jax.block_until_ready(out)

    ref_out, _ = reference_forward(x, y, raw, w_size=W_SIZE, ar=AR, groups=GROUPS)
    # bf16 MXU operands with f32 accumulation/residual -> slightly looser atol
    # than the pure-f32 v1 kernel; still tight enough to catch any tap/mask/
    # grouping/folding error (those produce O(0.1..1) discrepancies).
    np.testing.assert_allclose(np.asarray(out), np.asarray(ref_out),
                               rtol=5e-2, atol=3e-2)
    assert y_out.shape == y.shape
    print("KERNEL_OK")
</pallas_src>

<mosaic_0001>
module attributes {stable_mosaic.version = 11 : i64} {
  func.func @_residual_unit_kernel(%arg0: i32, %arg1: memref<1x32x128xf32, #tpu.memory_space<vmem>>, %arg2: memref<2x32x96xbf16, #tpu.memory_space<vmem>>, %arg3: memref<32x4xf32, #tpu.memory_space<vmem>>, %arg4: memref<1x32x128xf32, #tpu.memory_space<vmem>>) attributes {dimension_semantics = [#tpu.dimension_semantics<parallel>], iteration_bounds = array<i64: 2>, scalar_prefetch = 0 : i64, scratch_operands = 0 : i64, tpu.core_type = #tpu.core_type<tc>, window_params = [{transform_indices = @transform_0, window_bounds = array<i64: 1, 32, 128>}, {pipeline_mode = #tpu.pipeline_mode<synchronous>, transform_indices = @transform_1, window_bounds = array<i64: 2, 32, 96>}, {pipeline_mode = #tpu.pipeline_mode<synchronous>, transform_indices = @transform_2, window_bounds = array<i64: 32, 4>}, {transform_indices = @transform_3, window_bounds = array<i64: 1, 32, 128>}]} {
    %0 = tpu.iota {dimensions = array<i32: 1>} : vector<32x128xi32>
    %c0 = arith.constant 0 : index
    %c0_0 = arith.constant 0 : index
    %c0_1 = arith.constant 0 : index
    %1 = vector.load %arg2[%c0, %c0_0, %c0_1] : memref<2x32x96xbf16, #tpu.memory_space<vmem>>, vector<1x32x96xbf16>
    %2 = vector.shape_cast %1 : vector<1x32x96xbf16> to vector<32x96xbf16>
    %c1 = arith.constant 1 : index
    %c0_2 = arith.constant 0 : index
    %c0_3 = arith.constant 0 : index
    %3 = vector.load %arg2[%c1, %c0_2, %c0_3] : memref<2x32x96xbf16, #tpu.memory_space<vmem>>, vector<1x32x96xbf16>
    %4 = vector.shape_cast %3 : vector<1x32x96xbf16> to vector<32x96xbf16>
    %c0_4 = arith.constant 0 : index
    %c0_5 = arith.constant 0 : index
    %5 = vector.load %arg3[%c0_4, %c0_5] : memref<32x4xf32, #tpu.memory_space<vmem>>, vector<32x4xf32>
    %6 = vector.extract_strided_slice %5 {offsets = [0, 0], sizes = [32, 1], strides = [1, 1]} : vector<32x4xf32> to vector<32x1xf32>
    %7 = vector.extract_strided_slice %5 {offsets = [0, 1], sizes = [32, 1], strides = [1, 1]} : vector<32x4xf32> to vector<32x1xf32>
    %8 = vector.extract_strided_slice %5 {offsets = [0, 2], sizes = [32, 1], strides = [1, 1]} : vector<32x4xf32> to vector<32x1xf32>
    %9 = vector.extract_strided_slice %5 {offsets = [0, 3], sizes = [32, 1], strides = [1, 1]} : vector<32x4xf32> to vector<32x1xf32>
    %c0_6 = arith.constant 0 : index
    %c0_7 = arith.constant 0 : index
    %c0_8 = arith.constant 0 : index
    %10 = vector.load %arg1[%c0_6, %c0_7, %c0_8] : memref<1x32x128xf32, #tpu.memory_space<vmem>>, vector<1x32x128xf32>
    %11 = vector.shape_cast %10 : vector<1x32x128xf32> to vector<32x128xf32>
    %c2_i32 = arith.constant 2 : i32
    %12 = tpu.dynamic_rotate %11 by %c2_i32 dim 1 : vector<32x128xf32>, i32 -> vector<32x128xf32>
    %c-2_i32 = arith.constant -2 : i32
    %13 = vector.broadcast %c-2_i32 : i32 to vector<32x128xi32>
    %14 = arith.addi %0, %13 : vector<32x128xi32>
    %c0_i32 = arith.constant 0 : i32
    %15 = vector.broadcast %c0_i32 : i32 to vector<32x128xi32>
    %16 = arith.cmpi sge, %14, %15 : vector<32x128xi32>
    %c-2_i32_9 = arith.constant -2 : i32
    %17 = vector.broadcast %c-2_i32_9 : i32 to vector<32x128xi32>
    %18 = arith.addi %0, %17 : vector<32x128xi32>
    %c128_i32 = arith.constant 128 : i32
    %19 = vector.broadcast %c128_i32 : i32 to vector<32x128xi32>
    %20 = arith.cmpi slt, %18, %19 : vector<32x128xi32>
    %21 = arith.andi %16, %20 : vector<32x128xi1>
    %cst = arith.constant 0.000000e+00 : f32
    %22 = vector.broadcast %cst : f32 to vector<32x128xf32>
    %23 = arith.select %21, %12, %22 : vector<32x128xi1>, vector<32x128xf32>
    %24 = arith.truncf %23 : vector<32x128xf32> to vector<32x128xbf16>
    %25 = arith.truncf %11 : vector<32x128xf32> to vector<32x128xbf16>
    %c126_i32 = arith.constant 126 : i32
    %26 = tpu.dynamic_rotate %11 by %c126_i32 dim 1 : vector<32x128xf32>, i32 -> vector<32x128xf32>
    %c2_i32_10 = arith.constant 2 : i32
    %27 = vector.broadcast %c2_i32_10 : i32 to vector<32x128xi32>
    %28 = arith.addi %0, %27 : vector<32x128xi32>
    %c0_i32_11 = arith.constant 0 : i32
    %29 = vector.broadcast %c0_i32_11 : i32 to vector<32x128xi32>
    %30 = arith.cmpi sge, %28, %29 : vector<32x128xi32>
    %c2_i32_12 = arith.constant 2 : i32
    %31 = vector.broadcast %c2_i32_12 : i32 to vector<32x128xi32>
    %32 = arith.addi %0, %31 : vector<32x128xi32>
    %c128_i32_13 = arith.constant 128 : i32
    %33 = vector.broadcast %c128_i32_13 : i32 to vector<32x128xi32>
    %34 = arith.cmpi slt, %32, %33 : vector<32x128xi32>
    %35 = arith.andi %30, %34 : vector<32x128xi1>
    %cst_14 = arith.constant 0.000000e+00 : f32
    %36 = vector.broadcast %cst_14 : f32 to vector<32x128xf32>
    %37 = arith.select %35, %26, %36 : vector<32x128xi1>, vector<32x128xf32>
    %38 = arith.truncf %37 : vector<32x128xf32> to vector<32x128xbf16>
    %39 = tpu.concatenate %24, %25, %38 in 0 : vector<32x128xbf16>, vector<32x128xbf16>, vector<32x128xbf16> -> vector<96x128xbf16>
    %cst_15 = arith.constant dense<0.000000e+00> : vector<32x128xf32>
    %40 = tpu.matmul %2, %39, %cst_15 {dimension_numbers = #tpu.dot_dimension_numbers<[1], [0], [0], [1], [0, 0, 1, 1], [], []>} : vector<32x96xbf16>, vector<96x128xbf16>, vector<32x128xf32> -> vector<32x128xf32>
    %41 = vector.broadcast %6 : vector<32x1xf32> to vector<32x128xf32>
    %42 = arith.mulf %40, %41 : vector<32x128xf32>
    %43 = vector.broadcast %7 : vector<32x1xf32> to vector<32x128xf32>
    %44 = arith.addf %42, %43 : vector<32x128xf32>
    %cst_16 = arith.constant 0.000000e+00 : f32
    %45 = vector.broadcast %cst_16 : f32 to vector<32x128xf32>
    %46 = arith.cmpf ogt, %44, %45 : vector<32x128xf32>
    %cst_17 = arith.constant 1.000000e-01 : f32
    %47 = vector.broadcast %cst_17 : f32 to vector<32x128xf32>
    %48 = arith.mulf %47, %44 : vector<32x128xf32>
    %49 = arith.select %46, %44, %48 : vector<32x128xi1>, vector<32x128xf32>
    %c2_i32_18 = arith.constant 2 : i32
    %50 = tpu.dynamic_rotate %49 by %c2_i32_18 dim 1 : vector<32x128xf32>, i32 -> vector<32x128xf32>
    %c-2_i32_19 = arith.constant -2 : i32
    %51 = vector.broadcast %c-2_i32_19 : i32 to vector<32x128xi32>
    %52 = arith.addi %0, %51 : vector<32x128xi32>
    %c0_i32_20 = arith.constant 0 : i32
    %53 = vector.broadcast %c0_i32_20 : i32 to vector<32x128xi32>
    %54 = arith.cmpi sge, %52, %53 : vector<32x128xi32>
    %c-2_i32_21 = arith.constant -2 : i32
    %55 = vector.broadcast %c-2_i32_21 : i32 to vector<32x128xi32>
    %56 = arith.addi %0, %55 : vector<32x128xi32>
    %c128_i32_22 = arith.constant 128 : i32
    %57 = vector.broadcast %c128_i32_22 : i32 to vector<32x128xi32>
    %58 = arith.cmpi slt, %56, %57 : vector<32x128xi32>
    %59 = arith.andi %54, %58 : vector<32x128xi1>
    %cst_23 = arith.constant 0.000000e+00 : f32
    %60 = vector.broadcast %cst_23 : f32 to vector<32x128xf32>
    %61 = arith.select %59, %50, %60 : vector<32x128xi1>, vector<32x128xf32>
    %62 = arith.truncf %61 : vector<32x128xf32> to vector<32x128xbf16>
    %63 = arith.truncf %49 : vector<32x128xf32> to vector<32x128xbf16>
    %c126_i32_24 = arith.constant 126 : i32
    %64 = tpu.dynamic_rotate %49 by %c126_i32_24 dim 1 : vector<32x128xf32>, i32 -> vector<32x128xf32>
    %c2_i32_25 = arith.constant 2 : i32
    %65 = vector.broadcast %c2_i32_25 : i32 to vector<32x128xi32>
    %66 = arith.addi %0, %65 : vector<32x128xi32>
    %c0_i32_26 = arith.constant 0 : i32
    %67 = vector.broadcast %c0_i32_26 : i32 to vector<32x128xi32>
    %68 = arith.cmpi sge, %66, %67 : vector<32x128xi32>
    %c2_i32_27 = arith.constant 2 : i32
    %69 = vector.broadcast %c2_i32_27 : i32 to vector<32x128xi32>
    %70 = arith.addi %0, %69 : vector<32x128xi32>
    %c128_i32_28 = arith.constant 128 : i32
    %71 = vector.broadcast %c128_i32_28 : i32 to vector<32x128xi32>
    %72 = arith.cmpi slt, %70, %71 : vector<32x128xi32>
    %73 = arith.andi %68, %72 : vector<32x128xi1>
    %cst_29 = arith.constant 0.000000e+00 : f32
    %74 = vector.broadcast %cst_29 : f32 to vector<32x128xf32>
    %75 = arith.select %73, %64, %74 : vector<32x128xi1>, vector<32x128xf32>
    %76 = arith.truncf %75 : vector<32x128xf32> to vector<32x128xbf16>
    %77 = tpu.concatenate %62, %63, %76 in 0 : vector<32x128xbf16>, vector<32x128xbf16>, vector<32x128xbf16> -> vector<96x128xbf16>
    %cst_30 = arith.constant dense<0.000000e+00> : vector<32x128xf32>
    %78 = tpu.matmul %4, %77, %cst_30 {dimension_numbers = #tpu.dot_dimension_numbers<[1], [0], [0], [1], [0, 0, 1, 1], [], []>} : vector<32x96xbf16>, vector<96x128xbf16>, vector<32x128xf32> -> vector<32x128xf32>
    %79 = vector.broadcast %8 : vector<32x1xf32> to vector<32x128xf32>
    %80 = arith.mulf %78, %79 : vector<32x128xf32>
    %81 = vector.broadcast %9 : vector<32x1xf32> to vector<32x128xf32>
    %82 = arith.addf %80, %81 : vector<32x128xf32>
    %cst_31 = arith.constant 0.000000e+00 : f32
    %83 = vector.broadcast %cst_31 : f32 to vector<32x128xf32>
    %84 = arith.cmpf ogt, %82, %83 : vector<32x128xf32>
    %cst_32 = arith.constant 1.000000e-01 : f32
    %85 = vector.broadcast %cst_32 : f32 to vector<32x128xf32>
    %86 = arith.mulf %85, %82 : vector<32x128xf32>
    %87 = arith.select %84, %82, %86 : vector<32x128xi1>, vector<32x128xf32>
    %88 = arith.addf %11, %87 : vector<32x128xf32>
    %c0_33 = arith.constant 0 : index
    %c0_34 = arith.constant 0 : index
    %c0_35 = arith.constant 0 : index
    %89 = vector.load %arg4[%c0_33, %c0_34, %c0_35] : memref<1x32x128xf32, #tpu.memory_space<vmem>>, vector<1x32x128xf32>
    %90 = vector.shape_cast %89 : vector<1x32x128xf32> to vector<32x128xf32>
    %91 = vector.shape_cast %88 : vector<32x128xf32> to vector<1x32x128xf32>
    tpu.vector_store %arg4[%c0_33, %c0_34, %c0_35], %91 {strides = array<i32>} : memref<1x32x128xf32, #tpu.memory_space<vmem>>, vector<1x32x128xf32>,
    return
  }
  func.func @transform_0(%arg0: i32) -> (i32, i32, i32) {
    %c0_i32 = arith.constant 0 : i32
    %c0_i32_0 = arith.constant 0 : i32
    %c0_i32_1 = arith.constant 0 : i32
    return %arg0, %c0_i32, %c0_i32_0 : i32, i32, i32
  }
  func.func @transform_1(%arg0: i32) -> (i32, i32, i32) {
    %c0_i32 = arith.constant 0 : i32
    %c0_i32_0 = arith.constant 0 : i32
    %c0_i32_1 = arith.constant 0 : i32
    %c0_i32_2 = arith.constant 0 : i32
    return %c0_i32, %c0_i32_0, %c0_i32_1 : i32, i32, i32
  }
  func.func @transform_2(%arg0: i32) -> (i32, i32) {
    %c0_i32 = arith.constant 0 : i32
    %c0_i32_0 = arith.constant 0 : i32
    %c0_i32_1 = arith.constant 0 : i32
    return %c0_i32, %c0_i32_0 : i32, i32
  }
  func.func @transform_3(%arg0: i32) -> (i32, i32, i32) {
    %c0_i32 = arith.constant 0 : i32
    %c0_i32_0 = arith.constant 0 : i32
    %c0_i32_1 = arith.constant 0 : i32
    return %arg0, %c0_i32, %c0_i32_0 : i32, i32, i32
  }
}

</mosaic_0001>

<bundles_post_ra>
// kernel: tpu_custom_call.1
= control target key start
LH: loop header
LB: loop body
LE: loop exit
PB: predicated region body
PF: predicated region fallthrough
CT: control target
= control target key end

     0   :  { %8 = vsyncpa [#allocation3], 0  ;;  %s1237_s0 = inlined_call_operand.hbm [shape: f32[2,32,128], index: 0, kind: input, shape index: {}]   ;;  %s1238_s1 = inlined_call_operand.vmem [shape: bf16[2,32,96], index: 1, kind: input, shape index: {}]   ;;  %s1239_s2 = inlined_call_operand.vmem [shape: f32[32,4], index: 2, kind: input, shape index: {}]   ;;  %s1240_s3 = inlined_call_operand.hbm [shape: f32[2,32,128], index: 3, kind: output, shape index: {}]  }
   0x1   :  { %10 = vsyncpa [#allocation3 + $0x1], 0 }
   0x2   :  { %11 = vsyncpa [#allocation4], 0 }
   0x3   :  { %13 = vsyncpa [#allocation4 + $0x1], 0  ;;  %s951_s12 = smov 0   ;;  %s953_s13 = smov 0  }
   0x4   :  { %s955_s14 = smov 0   ;;  %s957_s15 = smov 0  }
   0x5 LB: > { %s972_s16 = sadd.s32 4294967295, %s917_s15   ;;  %s611_s17 = sadd.s32 4294967294, %s917_s15   ;;  %s917_s15 = sphi %s957_s15, %s1257_s15   ;;  %s913_s14 = sphi %s955_s14, %s1256_s14   ;;  %s909_s13 = sphi %s953_s13, %s1255_s13   ;;  %s905_s12 = sphi %s951_s12, %s1254_s12  }
   0x6   : > { %s976_s18 = sadd.s32 1, %s917_s15   ;;  %s26_s19 = sadd.s32 1, %s913_s14 }
   0x7   : > { %s23_s20 = ssub.s32 %s917_s15, %s976_s18  ;;  %p33_p0 = scmp.ne.s32.totalorder %s913_s14, %s909_s13 }
   0x8   : > { %p24_p1 = scmp.eq.s32.totalorder %s23_s20, 0  ;;  %p34_p2 = scmp.eq.s32.totalorder %s917_s15, 0 }
   0x9   : > { %p39_p3 = scmp.ne.s32.totalorder %s909_s13, %s905_s12  ;;  %p40_p4 = scmp.eq.s32.totalorder %s972_s16, 0 }
   0xa   : > { %s988_s21 = scalar_select %p24_p1, %s913_s14, %s26_s19  }
   0xb   : > { %p990_p5 = por %p34_p2, %p33_p0  ;;  %p994_p6 = por %p40_p4, %p39_p3 }
   0xc   : > { %p105_p7 = scmp.eq.s32.totalorder %s972_s16, 1  ;;  %p111_p8 = scmp.eq.s32.totalorder %s611_s17, 1 }
   0xd   : > { %p723_p10 = scmp.lt.s32.totalorder %s917_s15, 2  ;;  %s137_s26 = sand.u32 1, %s913_s14  }
   0xe   : > { %p1001_p11 = por %p105_p7, %p33_p0  ;;  %p1005_p12 = por %p111_p8, %p39_p3 }
   0xf   : > { %s661_s27 = sshll.u32 %s917_s15, 9  ;;  %s614_s28 = sshll.u32 %s137_s26, 5 }
  0x10   : > { %s1244_s24 = scalar_select %p1001_p11, 1, 0 }
  0x11   : > { %s1245_s25 = scalar_select %p1005_p12, 1, 0 }
  0x12   : > { %s1014_s4 = scalar_lea.hbm %s1237_s0, %s661_s27  ;;  %s141_s5 = scalar_lea.vmem [#allocation2], %s614_s28 }
  0x13   : > { %s148_s6 = sshll.u32 %s141_s5, 4  ;;  %p1018_p13 = pnand %p723_p10, %p990_p5  ;;  %s1022_s6 = int_to_ptr.vmem [resolvable:$true] %s148_s6 }
  0x14   : > { %s1024_s8 = scalar_lea.sflag [#allocation3], %s137_s26  ;;  %s821_s9 = scalar_lea.hbm %s1014_s4, 512 }
  0x15   : > { %p822_p0 = scmp.ne.s32.totalorder %s1014_s4, %s821_s9  ;;  %p823_p1 = pneg %p1018_p13 }
  0x16   : > { %s826_s17 = scalar_lea.hbm %s1237_s0, 1024  ;;  %p827_p4 = scmp.lt.u32.totalorder %s1014_s4, %s1237_s0 }
  0x17   : > { %p824_p2 = pnand %p823_p1, %p822_p0  ;;  %p828_p5 = scmp.lt.u32.totalorder %s826_s17, %s821_s9 }
  0x18   : > { %p830_p8 = scmp.lt.u32.totalorder %s821_s9, %s1014_s4 }
  0x19   : > { %p825_p3 = pneg %p824_p2  ;;  %p829_p7 = por %p828_p5, %p827_p4 }
  0x1b   : > { %p831_p10 = por %p830_p8, %p829_p7 }
  0x1d   : > { %p832_p9 = pnand %p831_p10, %p825_p3 }
  0x1f   : > { %835 = shalt.err (!%p832_p9)
}
  0x20   : > { %s836_s22 = scalar_lea.vmem %s1022_s6, 512  ;;  %s919_s26 = smov [#allocation2]  }
  0x21   : > { %p837_p0 = scmp.ne.s32.totalorder %s1022_s6, %s836_s22  ;;  %s841_s27 = sshll.u32 %s919_s26, 4  ;;  %s842_s27 = int_to_ptr.vmem [resolvable:$false] %s841_s27 }
  0x22   : > { %s843_s28 = scalar_lea.vmem %s842_s27, 1024  ;;  %p844_p11 = scmp.lt.s32.totalorder %s1022_s6, %s842_s27 }
  0x23   : > { %p839_p2 = pnand %p837_p0, %p823_p1  ;;  %p845_p4 = scmp.lt.s32.totalorder %s843_s28, %s836_s22 }
  0x25   : > { %p840_p12 = pneg %p839_p2  ;;  %p846_p5 = por %p845_p4, %p844_p11 }
  0x27   : > { %p847_p7 = pnand %p846_p5, %p840_p12 }
  0x29   : > { %850 = shalt.err (!%p847_p7)
}
  0x2a   : > { %s920_s29 = smov 128   ;;  %s921_s30 = smov 8  }
  0x2b   : > { %718 = dma.hbm_to_vmem [thread:$0]  (!%p1018_p13), %s1014_s4, 512, %s1022_s6, %s1024_s8, %s920_s29, %s920_s29, %s921_s30  }
  0x2c   : > { %p617_p9 = scmp.ge.s32.totalorder %s917_s15, 1  ;;  %p156_p1 = scmp.lt.s32.totalorder %s917_s15, 3 }
  0x2e   : > { %p157_p3 = pnand %p617_p9, %p156_p1 }
  0x2f   : > { %s1055_s5 = sand.u32 (!%p157_p3), 1, %s909_s13  }
  0x30   : > { %160 = sbr.rel (%p157_p3) target bundleno = 808 (0x328), region = 32  ;;  %s618_s9 = sshll.u32 (!%p157_p3), %s1055_s5, 5 }
  0x31   : > { %s163_s10 = scalar_lea.sflag (!%p157_p3), [#allocation3], %s1055_s5  ;;  %s166_s11 = scalar_lea.vmem (!%p157_p3), [#allocation2], %s618_s9 }
  0x37   : > { %896 = dma.done.wait (%p994_p6), %s163_s10, 512  }
  0x38   : > { %898 = vsyncadd (%p994_p6), %s163_s10, 4294966784  ;;  %v1065_v0 = vld [vmem:[%s166_s11] sm:$0xff]  ;;  %v1067_v1 = vld [vmem:[%s166_s11 + $0x8] sm:$0xff]  ;;  %s922_s4 = smov 2   ;;  %s923_s6 = smov 126   ;;  %vm257_vm0 = vcmask 785408   ;;  %v190_v13 = vlaneseq }
  0x39   : > { %v1069_v2 = vld [vmem:[%s166_s11 + $0x10] sm:$0xff]  ;;  %v767_v3 = vpack.i.bf16 %v1067_v1, %v1065_v0  ;;  %v1073_v4 = vld [vmem:[%s166_s11 + $0x18] sm:$0xff]  ;;  %v817_v6 = vld [vmem:[%s1238_s1] sm:$0xff]   ;;  %v924_v8 = vmov 0   ;;  %v925_v10 = vmov 1   ;;  %v227_v26 = vpack.c.bf16 %v1067_v1, %v1065_v0  ;;  %s662_s23 = sshll.u32 %s972_s16, 9 }
  0x3a   : > { %v772_v5 = vpack.i.bf16 %v1073_v4, %v1069_v2  ;;  %691 = vmatprep.mubr.msk.bf16.mxu0 %vm257_vm0, %v817_v6  ;;  %v1088_v7 = vld [vmem:[%s1239_s2 + $0x8] sm:$0xff]  ;;  %788 = vset.pattern.permute.xlu1 %v924_v8  ;;  %v1093_v9 = vld [vmem:[%s1239_s2] sm:$0xff]  ;;  %v1102_v11 = vld [vmem:[%s1239_s2 + $0x10] sm:$0xff]  ;;  %v191_v14 = vand.u32 127, %v190_v13  ;;  %v228_v30 = vpack.c.bf16 %v1073_v4, %v1069_v2  ;;  %s188_s7 = scalar_lea.vmem [#allocation5], %s618_s9  ;;  %s1190_s16 = scalar_lea.hbm %s1240_s3, %s662_s23 }
  0x3b   : > { %768 = vrot.lane.b32.xlu0 %v767_v3, %s922_s4  ;;  %778 = vrot.lane.b32.xlu1 %v767_v3, %s923_s6  ;;  %v1109_v12 = vld [vmem:[%s1239_s2 + $0x18] sm:$0xff]  ;;  %v818_v37 = vld [vmem:[%s1238_s1 + $0x8] sm:$0xff]   ;;  %s538_s8 = sshll.u32 %s188_s7, 4  ;;  %s525_s9 = scalar_lea.sflag [#allocation4], %s1055_s5  ;;  %s1192_s8 = int_to_ptr.vmem [resolvable:$true] %s538_s8 }
  0x3c   : > { %787 = vset.pattern.permute.xlu0 %v924_v8  ;;  %v217_v15 = vadd.s32 4294967294, %v191_v14  ;;  %v237_v27 = vadd.s32 2, %v191_v14  ;;  %v819_v14 = vld [vmem:[%s1238_s1 + $0x10] sm:$0xff]   ;;  %v820_v19 = vld [vmem:[%s1238_s1 + $0x18] sm:$0xff]   ;;  %s851_s20 = scalar_lea.vmem %s1192_s8, 512  ;;  %p1251_p11 = scmp.ne.s32.totalorder %s1244_s24, 0 }
  0x3d   : > { %707 = vmatprep.mubr.msk.bf16.mxu1 %vm257_vm0, %v819_v14  ;;  %p852_p6 = scmp.ne.s32.totalorder %s1192_s8, %s851_s20  ;;  %s928_s22 = smov [#allocation5]  }
  0x3e   : > { %vm218_vm1 = vcmp.ge.s32.totalorder %v217_v15, 0  ;;  %vm239_vm3 = vcmp.lt.s32.totalorder %v237_v27, 128  ;;  %v926_v15 = vmov 2   ;;  %s855_s26 = sshll.u32 %s928_s22, 4  ;;  %s856_s26 = int_to_ptr.vmem [resolvable:$false] %s855_s26 }
  0x3f   : > { %773 = vrot.lane.b32.xlu0 %v772_v5, %s922_s4  ;;  %783 = vrot.lane.b32.xlu1 %v772_v5, %s923_s6  ;;  %vm1113_vm2 = vmpackc.low %vm218_vm1, %vm218_vm1  ;;  %p853_p12 = pnand %p852_p6, %p1251_p11  ;;  %s857_s27 = scalar_lea.vmem %s856_s26, 1024 }
  0x40   : > { %vm1129_vm4 = vmpackc.low %vm239_vm3, %vm239_vm3  ;;  %p858_p8 = scmp.lt.s32.totalorder %s1192_s8, %s856_s26  ;;  %p859_p10 = scmp.lt.s32.totalorder %s857_s27, %s851_s20 }
  0x41   : > { %p854_p13 = pneg %p853_p12 }
  0x42   : > { %p860_p0 = por %p859_p10, %p858_p8 }
  0x43   : > { %320 = vperm.xlu1 %788, %v1088_v7   ;;  %315 = vperm.xlu0 %787, %v1093_v9  }
  0x44   : > { %p861_p2 = pnand %p860_p0, %p854_p13 }
  0x47   : > { %789 = vset.pattern.permute.xlu1 %v925_v10  ;;  %790 = vset.pattern.permute.xlu0 %v925_v10 }
  0x48   : > { %338 = vperm.xlu1 %789, %v1093_v9   ;;  %342 = vperm.xlu0 %790, %v1088_v7  }
  0x4c   : > { %791 = vset.pattern.permute.xlu1 %v924_v8  ;;  %346 = vperm.xlu0 %790, %v1102_v11  }
  0x4d   : > { %325 = vperm.xlu1 %791, %v1102_v11  }
  0x50   : > { %813 = vset.pattern.permute.xlu0 %v926_v15 }
  0x51   : > { %330 = vperm.xlu1 %791, %v1109_v12  }
  0x55   : > { %792 = vset.pattern.permute.xlu1 %v925_v10 }
  0x56   : > { %350 = vperm.xlu1 %792, %v1109_v12  }
  0x5a   : > { %814 = vset.pattern.permute.xlu1 %v926_v15 }
  0xad   : > { %v769_v16 = vpop.permute.xlu0 %768  ;;  %v779_v24 = vpop.permute.xlu1 %778 }
  0xae   : > { %v771_v17 = vunpack.i.h.bf16 %v769_v16  ;;  %v770_v18 = vunpack.i.l.bf16 %v769_v16  ;;  %v781_v28 = vunpack.i.h.bf16 %v779_v24  ;;  %v780_v29 = vunpack.i.l.bf16 %v779_v24 }
  0xaf   : > { %v927_v16 = vmov 3  }
  0xb0   : > { %v627_v20 = vpack.c.bf16 %v771_v17, %v770_v18  ;;  %v633_v32 = vpack.c.bf16 %v781_v28, %v780_v29 }
  0xb1   : > { %v774_v21 = vpop.permute.xlu0 %773  ;;  %v784_v31 = vpop.permute.xlu1 %783 }
  0xb2   : > { %v776_v22 = vunpack.i.h.bf16 %v774_v21  ;;  %v775_v23 = vunpack.i.l.bf16 %v774_v21  ;;  %679 = vmatprep.subr.msk.bf16.mxu0 %vm1113_vm2, %v627_v20  ;;  %v786_v33 = vunpack.i.h.bf16 %v784_v31  ;;  %v785_v34 = vunpack.i.l.bf16 %v784_v31 }
  0xb3   : > { %680 = vmatpush3.bf16.msk.msra.mxu0 %vm1113_vm2, %v627_v20 }
  0xb4   : > { %v630_v25 = vpack.c.bf16 %v776_v22, %v775_v23  ;;  %v636_v36 = vpack.c.bf16 %v786_v33, %v785_v34 }
  0xb6   : > { %681 = vmatprep.subr.msk.bf16.mxu0 %vm1113_vm2, %v630_v25 }
  0xb7   : > { %682 = vmatpush3.bf16.msk.msra.mxu0 %vm1113_vm2, %v630_v25 }
  0xb8   : > { %683 = vmatprep.subr.bf16.mxu0 %v227_v26 }
  0xbb   : > { %684 = vmatpush3.bf16.msra.mxu0 %v227_v26 }
  0xbc   : > { %685 = vmatprep.subr.bf16.mxu0 %v228_v30 }
  0xbf   : > { %686 = vmatpush3.bf16.msra.mxu0 %v228_v30 }
  0xc0   : > { %687 = vmatprep.subr.msk.bf16.mxu0 %vm1129_vm4, %v633_v32 }
  0xc2   : > { %v321_v38 = vpop.permute.xlu1 %320  ;;  %v316_v40 = vpop.permute.xlu0 %315 }
  0xc3   : > { %688 = vmatpush3.bf16.msk.msra.mxu0 %vm1129_vm4, %v633_v32 }
  0xc4   : > { %689 = vmatprep.subr.msk.bf16.mxu0 %vm1129_vm4, %v636_v36 }
  0xc7   : > { %690 = vmatpush3.bf16.msk.msra.mxu0 %vm1129_vm4, %v636_v36  ;;  %v339_v39 = vpop.permute.xlu1 %338  ;;  %v343_v42 = vpop.permute.xlu0 %342 }
  0xca   : > { %692 = vmatmul.mubr.msk.bf16.vlgmr.msra.gmra.mrb[0].mxu0 %vm257_vm0, %v818_v37 }
  0xcb   : > { %v347_v45 = vpop.permute.xlu0 %346 }
  0xcc   : > { %v326_v41 = vpop.permute.xlu1 %325 }
  0xd0   : > { %v331_v43 = vpop.permute.xlu1 %330 }
  0xd5   : > { %v351_v50 = vpop.permute.xlu1 %350 }
 0x19d   : > { %v693_v44 = vpop.f32.mrb[0].mxu0 }
 0x19e   : > { %v335_v46 = vmul.f32 %v693_v44, %v326_v41  ;;  %v298_v47 = vpop.f32.mrb[1].mxu0 }
 0x19f   : > { %v333_v48 = vmul.f32 %v316_v40, %v298_v47  ;;  %v694_v49 = vpop.f32.mrb[2].mxu0 }
 0x1a0   : > { %v355_v51 = vadd.f32 %v347_v45, %v335_v46  ;;  %v336_v52 = vmul.f32 %v694_v49, %v331_v43  ;;  %v301_v53 = vpop.f32.mrb[3].mxu0 }
 0x1a1   : > { %v353_v54 = vadd.f32 %v339_v39, %v333_v48  ;;  %v334_v55 = vmul.f32 %v321_v38, %v301_v53 }
 0x1a2   : > { %v363_v56 = vmul.f32 0.1, %v355_v51  ;;  %v356_v57 = vadd.f32 %v351_v50, %v336_v52  ;;  %vm359_vm6 = vcmp.gt.f32.partialorder %v355_v51, 0.0 }
 0x1a3   : > { %vm357_vm5 = vcmp.gt.f32.partialorder %v353_v54, 0.0  ;;  %v361_v58 = vmul.f32 0.1, %v353_v54  ;;  %v354_v59 = vadd.f32 %v343_v42, %v334_v55 }
 0x1a4   : > { %vm360_vm7 = vcmp.gt.f32.partialorder %v356_v57, 0.0  ;;  %v364_v60 = vmul.f32 0.1, %v356_v57  ;;  %v367_v62 = vsel %vm359_vm6, %v355_v51, %v363_v56 }
 0x1a5   : > { %vm358_vm8 = vcmp.gt.f32.partialorder %v354_v59, 0.0  ;;  %v362_v61 = vmul.f32 0.1, %v354_v59  ;;  %v365_v3 = vsel %vm357_vm5, %v353_v54, %v361_v58 }
 0x1a6   : > { %v368_v63 = vsel %vm360_vm7, %v356_v57, %v364_v60 }
 0x1a7   : > { %v798_v5 = vpack.i.bf16 %v368_v63, %v367_v62  ;;  %v366_v6 = vsel %vm358_vm8, %v354_v59, %v362_v61  ;;  %v384_v8 = vpack.c.bf16 %v368_v63, %v367_v62 }
 0x1a8   : > { %v793_v10 = vpack.i.bf16 %v366_v6, %v365_v3  ;;  %v383_v13 = vpack.c.bf16 %v366_v6, %v365_v3 }
 0x1a9   : > { %799 = vrot.lane.b32.xlu1 %v798_v5, %s922_s4 }
 0x1aa   : > { %794 = vrot.lane.b32.xlu0 %v793_v10, %s922_s4 }
 0x1ad   : > { %809 = vrot.lane.b32.xlu1 %v798_v5, %s923_s6 }
 0x1ae   : > { %804 = vrot.lane.b32.xlu0 %v793_v10, %s923_s6 }
 0x1b1   : > { %469 = vperm.xlu1 %814, %v1088_v7  }
 0x1b2   : > { %465 = vperm.xlu0 %813, %v1093_v9  }
 0x1b5   : > { %473 = vperm.xlu1 %814, %v1102_v11  }
 0x1b6   : > { %477 = vperm.xlu0 %813, %v1109_v12  }
 0x1b9   : > { %815 = vset.pattern.permute.xlu1 %v927_v16 }
 0x1ba   : > { %816 = vset.pattern.permute.xlu0 %v927_v16  ;;  %485 = vperm.xlu1 %815, %v1093_v9  }
 0x1bb   : > { %489 = vperm.xlu0 %816, %v1088_v7  }
 0x1be   : > { %493 = vperm.xlu1 %815, %v1102_v11  }
 0x1c2   : > { %497 = vperm.xlu1 %815, %v1109_v12  }
 0x21b   : > { %v800_v17 = vpop.permute.xlu1 %799 }
 0x21c   : > { %v795_v18 = vpop.permute.xlu0 %794  ;;  %v802_v20 = vunpack.i.h.bf16 %v800_v17  ;;  %v801_v21 = vunpack.i.l.bf16 %v800_v17 }
 0x21d   : > { %v797_v22 = vunpack.i.h.bf16 %v795_v18  ;;  %v796_v23 = vunpack.i.l.bf16 %v795_v18 }
 0x21e   : > { %v646_v25 = vpack.c.bf16 %v802_v20, %v801_v21 }
 0x21f   : > { %v643_v24 = vpack.c.bf16 %v797_v22, %v796_v23  ;;  %v810_v12 = vpop.permute.xlu1 %809 }
 0x220   : > { %v805_v7 = vpop.permute.xlu0 %804  ;;  %v812_v26 = vunpack.i.h.bf16 %v810_v12  ;;  %v811_v27 = vunpack.i.l.bf16 %v810_v12 }
 0x221   : > { %695 = vmatprep.subr.msk.bf16.mxu1 %vm1113_vm2, %v643_v24  ;;  %v807_v9 = vunpack.i.h.bf16 %v805_v7  ;;  %v806_v11 = vunpack.i.l.bf16 %v805_v7 }
 0x222   : > { %696 = vmatpush3.bf16.msk.msra.mxu1 %vm1113_vm2, %v643_v24  ;;  %v652_v29 = vpack.c.bf16 %v812_v26, %v811_v27 }
 0x223   : > { %697 = vmatprep.subr.msk.bf16.mxu1 %vm1113_vm2, %v646_v25  ;;  %v649_v28 = vpack.c.bf16 %v807_v9, %v806_v11 }
 0x226   : > { %698 = vmatpush3.bf16.msk.msra.mxu1 %vm1113_vm2, %v646_v25 }
 0x227   : > { %699 = vmatprep.subr.bf16.mxu1 %v383_v13 }
 0x22a   : > { %700 = vmatpush3.bf16.msra.mxu1 %v383_v13 }
 0x22b   : > { %701 = vmatprep.subr.bf16.mxu1 %v384_v8 }
 0x22e   : > { %702 = vmatpush3.bf16.msra.mxu1 %v384_v8 }
 0x22f   : > { %703 = vmatprep.subr.msk.bf16.mxu1 %vm1129_vm4, %v649_v28 }
 0x230   : > { %v470_v30 = vpop.permute.xlu1 %469 }
 0x231   : > { %v466_v33 = vpop.permute.xlu0 %465 }
 0x232   : > { %704 = vmatpush3.bf16.msk.msra.mxu1 %vm1129_vm4, %v649_v28 }
 0x233   : > { %705 = vmatprep.subr.msk.bf16.mxu1 %vm1129_vm4, %v652_v29 }
 0x234   : > { %v474_v31 = vpop.permute.xlu1 %473 }
 0x235   : > { %v478_v36 = vpop.permute.xlu0 %477 }
 0x236   : > { %706 = vmatpush3.bf16.msk.msra.mxu1 %vm1129_vm4, %v652_v29 }
 0x239   : > { %708 = vmatmul.mubr.msk.bf16.vlgmr.msra.gmra.mrb[0].mxu1 %vm257_vm0, %v820_v19  ;;  %v486_v32 = vpop.permute.xlu1 %485 }
 0x23a   : > { %v490_v35 = vpop.permute.xlu0 %489 }
 0x23d   : > { %v494_v34 = vpop.permute.xlu1 %493 }
 0x241   : > { %v498_v45 = vpop.permute.xlu1 %497 }
 0x30c   : > { %v709_v37 = vpop.f32.mrb[0].mxu1 }
 0x30d   : > { %v482_v38 = vmul.f32 %v709_v37, %v474_v31  ;;  %v449_v39 = vpop.f32.mrb[1].mxu1 }
 0x30e   : > { %v480_v40 = vmul.f32 %v466_v33, %v449_v39  ;;  %v710_v41 = vpop.f32.mrb[2].mxu1 }
 0x30f   : > { %v502_v42 = vadd.f32 %v494_v34, %v482_v38  ;;  %v483_v43 = vmul.f32 %v710_v41, %v478_v36  ;;  %v452_v44 = vpop.f32.mrb[3].mxu1 }
 0x310   : > { %v500_v46 = vadd.f32 %v486_v32, %v480_v40  ;;  %v481_v47 = vmul.f32 %v470_v30, %v452_v44 }
 0x311   : > { %vm506_vm9 = vcmp.gt.f32.partialorder %v502_v42, 0.0  ;;  %v510_v48 = vmul.f32 0.1, %v502_v42  ;;  %v503_v49 = vadd.f32 %v498_v45, %v483_v43 }
 0x312   : > { %vm504_vm10 = vcmp.gt.f32.partialorder %v500_v46, 0.0  ;;  %v508_v50 = vmul.f32 0.1, %v500_v46  ;;  %v501_v51 = vadd.f32 %v490_v35, %v481_v47 }
 0x313   : > { %v514_v52 = vsel %vm506_vm9, %v502_v42, %v510_v48  ;;  %vm507_vm11 = vcmp.gt.f32.partialorder %v503_v49, 0.0  ;;  %v511_v53 = vmul.f32 0.1, %v503_v49 }
 0x314   : > { %v518_v54 = vadd.f32 %v514_v52, %v1069_v2  ;;  %v512_v55 = vsel %vm504_vm10, %v500_v46, %v508_v50  ;;  %vm505_vm12 = vcmp.gt.f32.partialorder %v501_v51, 0.0  ;;  %v509_v56 = vmul.f32 0.1, %v501_v51 }
 0x315   : > { %v516_v57 = vadd.f32 %v512_v55, %v1065_v0  ;;  %v515_v58 = vsel %vm507_vm11, %v503_v49, %v511_v53 }
 0x316   : > { %522 = vst [vmem:[%s188_s7 + $0x10] sm:$0xff] %v518_v54  ;;  %v519_v59 = vadd.f32 %v515_v58, %v1073_v4  ;;  %v513_v60 = vsel %vm505_vm12, %v501_v51, %v509_v56 }
 0x317   : > { %520 = vst [vmem:[%s188_s7] sm:$0xff] %v516_v57  ;;  %v517_v2 = vadd.f32 %v513_v60, %v1067_v1 }
 0x318   : > { %523 = vst [vmem:[%s188_s7 + $0x18] sm:$0xff] %v519_v59 }
 0x319   : > { %521 = vst [vmem:[%s188_s7 + $0x8] sm:$0xff] %v517_v2 }
 0x31a   : > { %864 = shalt.err (!%p861_p2)
}
 0x31b   : > { %s865_s28 = scalar_lea.hbm %s1190_s16, 512  ;;  %s869_s10 = scalar_lea.hbm %s1240_s3, 1024 }
 0x31c   : > { %p866_p4 = scmp.ne.s32.totalorder %s1190_s16, %s865_s28  ;;  %p870_p9 = scmp.lt.u32.totalorder %s1190_s16, %s1240_s3 }
 0x31d   : > { %p871_p1 = scmp.lt.u32.totalorder %s869_s10, %s865_s28  ;;  %p873_p6 = scmp.lt.u32.totalorder %s865_s28, %s1190_s16 }
 0x31e   : > { %p867_p5 = pnand %p866_p4, %p1251_p11 }
 0x31f   : > { %p872_p3 = por %p871_p1, %p870_p9 }
 0x320   : > { %p868_p7 = pneg %p867_p5 }
 0x321   : > { %p874_p12 = por %p873_p6, %p872_p3 }
 0x323   : > { %p875_p13 = pnand %p874_p12, %p868_p7 }
 0x325   : > { %878 = shalt.err (!%p875_p13)
}
 0x326   : > { %s929_s6 = smov 128   ;;  %s930_s23 = smov 8  }
 0x327   : > { %713 = dma.vmem_to_hbm [thread:$0]  (%p1251_p11), %s1192_s8, 512, %s1190_s16, %s525_s9, %s929_s6, %s929_s6, %s930_s23  }
 0x328 PF: > { %s553_s7 = sand.u32 1, %s905_s12   ;;  %p1252_p8 = scmp.ne.s32.totalorder %s1245_s25, 0 }
 0x329   : > { %p1253_p10 = scmp.ge.s32.totalorder %s917_s15, 2  ;;  %s554_s17 = scalar_lea.sflag [#allocation4], %s553_s7 }
 0x32b   : > { %p720_p0 = pnand %p1253_p10, %p1252_p8 }
 0x32d   : > { %900 = dma.done.wait (!%p720_p0), %s554_s17, 512  }
 0x32e   : > { %902 = vsyncadd (!%p720_p0), %s554_s17, 4294966784  ;;  %p16_p2 = scmp.ge.s32.totalorder %s976_s18, 4   ;;  %s1254_s12 = smov %s909_s13 }
 0x32f   : > { %s1255_s13 = smov %s913_s14  ;;  %s1256_s14 = smov %s988_s21 }
 0x330   : > { %s1257_s15 = smov %s976_s18  ;;  %18 = sbr.rel (!%p16_p2) target bundleno = 5 (0x5), region = 78 }
 0x337   :  { %559 = vsyncpa [#allocation3], 1 }
 0x338   :  { %561 = vsyncpa [#allocation3 + $0x1], 1 }
 0x339   :  { %562 = vsyncpa [#allocation4], 1 }
 0x33a   :  { %564 = vsyncpa [#allocation4 + $0x1], 1 }

</bundles_post_ra>
